<compile_context>
chip_gen: v7x
topology: tpu7x:2x2x1
jax: 0.10.0
libtpu: 0.0.40
codegen_flags: <defaults>
</compile_context>

<pallas_src>
import jax
import jax.numpy as jnp
from jax.experimental import pallas as pl
from jax.experimental.pallas import tpu as pltpu


def _logreg_kernel(w_ref, b_ref, x_ref, o_ref):
    # w_ref, b_ref: (1,) f32 scalars in SMEM (Linear(1,1) weight / bias)
    # x_ref, o_ref: lane-dense f32 tiles in VMEM
    w = w_ref[0]
    b = b_ref[0]
    z = x_ref[...] * w + b                         # elementwise on the VPU
    # Exact sigmoid via one EUP transcendental: sigmoid(z) = 0.5*tanh(z/2) + 0.5
    o_ref[...] = (0.5 * jnp.tanh(0.5 * z) + 0.5).astype(o_ref.dtype)


def logistic_regression_forward(
    x,
    weight,
    bias,
    *,
    tile_rows=2048,
    lane_cols=1024,
    xla_min_elems=2048,
    out_dtype=jnp.float32,
):
    """sigmoid(x @ weight.T + bias) for a Linear(1, 1) layer.

    x: (..., 1) f32 (any leading shape), weight: (1, 1), bias: (1,).
    Returns out_dtype (default f32, matching PyTorch) with the same shape as x.
    """
    orig_shape = x.shape
    xf = jnp.ravel(x).astype(jnp.float32)          # metadata-only for (N,1) f32
    n = xf.shape[0]

    w_s = weight.reshape((1,)).astype(jnp.float32)
    b_s = bias.reshape((1,)).astype(jnp.float32)

    # ---- tiny-N path: launch overhead dominates; one fused XLA elementwise op ----
    if n < xla_min_elems:
        out = jax.nn.sigmoid(xf * w_s[0] + b_s[0]).astype(out_dtype)
        return out.reshape(orig_shape)

    # ---- streaming path: lane-dense slab + 1-D grid (HBM-bandwidth bound) ----
    # Pad only to the 8*lane_cols boundary (at most 8*lane_cols-1 elements); when n
    # is already aligned this is a pure-metadata reshape with zero wrapper copies.
    align = 8 * lane_cols
    pad = (-n) % align
    if pad:
        xf = jnp.pad(xf, (0, pad))
    x2 = xf.reshape(-1, lane_cols)                 # metadata-only reshape
    rows = x2.shape[0]                             # multiple of 8

    tr = min(tile_rows, rows)                      # stays a multiple of 8
    grid = (pl.cdiv(rows, tr),)                    # partial last block -> masked by Pallas

    out2 = pl.pallas_call(
        _logreg_kernel,
        out_shape=jax.ShapeDtypeStruct((rows, lane_cols), out_dtype),
        grid_spec=pltpu.PrefetchScalarGridSpec(
            num_scalar_prefetch=2,                 # weight, bias land in SMEM pre-grid
            grid=grid,
            in_specs=[
                pl.BlockSpec((tr, lane_cols), lambda i, w, b: (i, 0)),
            ],
            out_specs=pl.BlockSpec((tr, lane_cols), lambda i, w, b: (i, 0)),
        ),
        compiler_params=pltpu.CompilerParams(
            dimension_semantics=("parallel",),     # shard over v7x's 2 TCs; no-op on 1-TC chips
            vmem_limit_bytes=40 << 20,             # 2x(in+out) 8 MiB tiles + headroom
        ),
        cost_estimate=pl.CostEstimate(
            flops=2 * n, transcendentals=n, bytes_accessed=8 * n
        ),
    )(w_s, b_s, x2)

    return out2.reshape(-1)[:n].reshape(orig_shape)


if __name__ == "__main__":
    # Deterministic parameter init (PyTorch Linear(1,1) default: U(-1, 1) since fan_in=1)
    key = jax.random.PRNGKey(0)
    kw, kb, kx = jax.random.split(key, 3)
    weight = jax.random.uniform(kw, (1, 1), jnp.float32, minval=-1.0, maxval=1.0)
    bias = jax.random.uniform(kb, (1,), jnp.float32, minval=-1.0, maxval=1.0)

    # 1) The module's intended data: x = linspace(0, 10, 200) as (200, 1)
    #    -> tiny-N fused-XLA path (per perf review; Pallas launch would dominate).
    x = jnp.linspace(0.0, 10.0, num=200, dtype=jnp.float32).reshape(200, 1)
    out = jax.block_until_ready(logistic_regression_forward(x, weight, bias))
    ref = jax.nn.sigmoid(x @ weight.T + bias)
    assert out.shape == (200, 1)
    assert jnp.allclose(out, ref, atol=1e-6, rtol=1e-6)

    # 2) Streaming Pallas path with small tiles: exercises the minimal 8*lane_cols
    #    padding, the cdiv grid, and a masked partial last block
    #    (n=4396 -> 40 rows of 128 lanes, 16-row tiles -> grid=3, last block partial).
    n_big = 4396
    x_big = jax.random.normal(kx, (n_big, 1), jnp.float32)
    out_big = jax.block_until_ready(
        logistic_regression_forward(x_big, weight, bias, tile_rows=16, lane_cols=128)
    )
    ref_big = jax.nn.sigmoid(x_big @ weight.T + bias)
    assert out_big.shape == (n_big, 1)
    assert jnp.allclose(out_big, ref_big, atol=1e-6, rtol=1e-6)

    # 3) Fully aligned case (n % (8*lane_cols) == 0): zero wrapper padding/copies,
    #    multi-step grid with full blocks only.
    n_al = 8 * 128 * 4  # 4096
    x_al = jax.random.normal(jax.random.fold_in(kx, 1), (n_al, 1), jnp.float32)
    out_al = jax.block_until_ready(
        logistic_regression_forward(x_al, weight, bias, tile_rows=8, lane_cols=128)
    )
    ref_al = jax.nn.sigmoid(x_al @ weight.T + bias)
    assert out_al.shape == (n_al, 1)
    assert jnp.allclose(out_al, ref_al, atol=1e-6, rtol=1e-6)

    print("KERNEL_OK")
</pallas_src>

<mosaic_0001>
module attributes {stable_mosaic.version = 11 : i64} {
  func.func @_logreg_kernel(%arg0: i32, %arg1: memref<1xf32, #tpu.memory_space<smem>>, %arg2: memref<1xf32, #tpu.memory_space<smem>>, %arg3: memref<16x128xf32, #tpu.memory_space<vmem>>, %arg4: memref<16x128xf32, #tpu.memory_space<vmem>>) attributes {dimension_semantics = [#tpu.dimension_semantics<parallel>], iteration_bounds = array<i64: 3>, scalar_prefetch = 2 : i64, scratch_operands = 0 : i64, tpu.core_type = #tpu.core_type<tc>, window_params = [{transform_indices = @transform_0, window_bounds = array<i64: 16, 128>}, {transform_indices = @transform_1, window_bounds = array<i64: 16, 128>}]} {
    %c0 = arith.constant 0 : index
    %0 = memref.load %arg1[%c0] : memref<1xf32, #tpu.memory_space<smem>>
    %c0_0 = arith.constant 0 : index
    %1 = memref.load %arg2[%c0_0] : memref<1xf32, #tpu.memory_space<smem>>
    %c0_1 = arith.constant 0 : index
    %c0_2 = arith.constant 0 : index
    %2 = vector.load %arg3[%c0_1, %c0_2] : memref<16x128xf32, #tpu.memory_space<vmem>>, vector<16x128xf32>
    %3 = vector.broadcast %0 : f32 to vector<16x128xf32>
    %4 = arith.mulf %2, %3 : vector<16x128xf32>
    %5 = vector.broadcast %1 : f32 to vector<16x128xf32>
    %6 = arith.addf %4, %5 : vector<16x128xf32>
    %cst = arith.constant 5.000000e-01 : f32
    %7 = vector.broadcast %cst : f32 to vector<16x128xf32>
    %8 = arith.mulf %7, %6 : vector<16x128xf32>
    %9 = math.tanh %8 : vector<16x128xf32>
    %cst_3 = arith.constant 5.000000e-01 : f32
    %10 = vector.broadcast %cst_3 : f32 to vector<16x128xf32>
    %11 = arith.mulf %10, %9 : vector<16x128xf32>
    %cst_4 = arith.constant 5.000000e-01 : f32
    %12 = vector.broadcast %cst_4 : f32 to vector<16x128xf32>
    %13 = arith.addf %11, %12 : vector<16x128xf32>
    %c0_5 = arith.constant 0 : index
    %c0_6 = arith.constant 0 : index
    %14 = vector.load %arg4[%c0_5, %c0_6] : memref<16x128xf32, #tpu.memory_space<vmem>>, vector<16x128xf32>
    tpu.vector_store %arg4[%c0_5, %c0_6], %13 {strides = array<i32>} : memref<16x128xf32, #tpu.memory_space<vmem>>, vector<16x128xf32>,
    return
  }
  func.func @transform_0(%arg0: i32, %arg1: memref<1xf32, #tpu.memory_space<smem>>, %arg2: memref<1xf32, #tpu.memory_space<smem>>) -> (i32, i32) {
    %c0_i32 = arith.constant 0 : i32
    %c0_i32_0 = arith.constant 0 : i32
    return %arg0, %c0_i32 : i32, i32
  }
  func.func @transform_1(%arg0: i32, %arg1: memref<1xf32, #tpu.memory_space<smem>>, %arg2: memref<1xf32, #tpu.memory_space<smem>>) -> (i32, i32) {
    %c0_i32 = arith.constant 0 : i32
    %c0_i32_0 = arith.constant 0 : i32
    return %arg0, %c0_i32 : i32, i32
  }
}

</mosaic_0001>

<bundles_post_ra>
// kernel: tpu_custom_call.1
= control target key start
LH: loop header
LB: loop body
LE: loop exit
PB: predicated region body
PF: predicated region fallthrough
CT: control target
= control target key end

     0   :  { %s634_s0 = inlined_call_operand.<no memory space> [shape: f32[1], index: 0, kind: input, shape index: {}]   ;;  %s635_s1 = inlined_call_operand.<no memory space> [shape: f32[1], index: 1, kind: input, shape index: {}]   ;;  %s636_s2 = inlined_call_operand.hbm [shape: f32[40,128], index: 2, kind: input, shape index: {}]   ;;  %s637_s3 = inlined_call_operand.hbm [shape: f32[40,128], index: 3, kind: output, shape index: {}]  }
   0x1   :  { %8 = sst [smem:[#allocation3]] %s634_s0 }
   0x2   :  { %9 = sst [smem:[#allocation4]] %s635_s1 }
   0x3   :  { %10 = vsyncpa [#allocation6], 0 }
   0x4   :  { %12 = vsyncpa [#allocation6 + $0x1], 0 }
   0x5   :  { %13 = vsyncpa [#allocation7], 0 }
   0x6   :  { %15 = vsyncpa [#allocation7 + $0x1], 0  ;;  %s467_s16 = smov 0   ;;  %s469_s17 = smov 0  }
   0x7   :  { %s471_s18 = smov 0   ;;  %s473_s19 = smov 0  }
   0x8 LB: > { %s488_s0 = sadd.s32 4294967295, %s433_s19   ;;  %s268_s1 = sadd.s32 4294967294, %s433_s19   ;;  %s433_s19 = sphi %s473_s19, %s645_s19   ;;  %s429_s18 = sphi %s471_s18, %s644_s18   ;;  %s425_s17 = sphi %s469_s17, %s643_s17   ;;  %s421_s16 = sphi %s467_s16, %s642_s16  }
   0x9   : > { %s492_s20 = sadd.s32 1, %s433_s19   ;;  %s28_s21 = sadd.s32 1, %s429_s18 }
   0xa   : > { %s25_s22 = ssub.s32 %s433_s19, %s492_s20  ;;  %p35_p0 = scmp.ne.s32.totalorder %s429_s18, %s425_s17 }
   0xb   : > { %p26_p1 = scmp.eq.s32.totalorder %s25_s22, 0  ;;  %p36_p2 = scmp.eq.s32.totalorder %s433_s19, 0 }
   0xc   : > { %p41_p3 = scmp.ne.s32.totalorder %s425_s17, %s421_s16  ;;  %p42_p4 = scmp.eq.s32.totalorder %s488_s0, 0 }
   0xd   : > { %s504_s23 = scalar_select %p26_p1, %s429_s18, %s28_s21  }
   0xe   : > { %p37_p5 = por %p36_p2, %p35_p0  ;;  %p506_p6 = por %p42_p4, %p41_p3 }
   0xf   : > { %p65_p7 = scmp.eq.s32.totalorder %s488_s0, 2  ;;  %p71_p8 = scmp.eq.s32.totalorder %s268_s1, 2 }
  0x10   : > { %p270_p11 = scmp.ge.s32.totalorder %s433_s19, 3 }
  0x11   : > { %p511_p9 = por %p65_p7, %p35_p0  ;;  %p515_p10 = por %p71_p8, %p41_p3 }
  0x12   : > { %87 = sbr.rel (%p270_p11) target bundleno = 60 (0x3c), region = 16 }
  0x13   : > { %s640_s26 = scalar_select %p515_p10, 1, 0 }
  0x19   : > { %90 = sbr.rel (!%p37_p5) target bundleno = 60 (0x3c), region = 20  ;;  %s91_s27 = sand.u32 (%p37_p5), 1, %s429_s18  }
  0x1a   : > { %s272_s28 = sshll.u32 (%p37_p5), %s433_s19, 1  ;;  %s271_s29 = sshll.u32 (%p37_p5), %s91_s27, 4 }
  0x1b   : > { %s97_s30 = ssub.s32 (%p37_p5), 5, %s272_s28  ;;  %s525_s6 = scalar_lea.sflag (%p37_p5), [#allocation6], %s91_s27 }
  0x1c   : > { %p98_p12 = scmp.lt.s32.totalorder (%p37_p5), %s97_s30, 2  ;;  %s95_s7 = scalar_lea.vmem (%p37_p5), [#allocation5], %s271_s29 }
  0x20   : > { %s647_s30 = smov (!%p98_p12, %s97_s30), 2 }
  0x21   : > { %s522_s4 = sshll.u32 %s647_s30, 7 }
  0x22   : > { %s102_s5 = ssub.s32 256, %s522_s4 }
  0x23   : > { %103 = vsyncadd %s525_s6, %s102_s5  ;;  %p274_p13 = scmp.ne.s32.totalorder %s522_s4, 0  ;;  %s290_s8 = sshll.u32 %s433_s19, 8 }
  0x24   : > { %s533_s11 = scalar_lea.hbm %s636_s2, %s290_s8  ;;  %s108_s12 = sshll.u32 %s95_s7, 4  ;;  %s535_s12 = int_to_ptr.vmem [resolvable:$true] %s108_s12 }
  0x25   : > { %s339_s13 = scalar_lea.hbm %s533_s11, %s522_s4  ;;  %s343_s1 = scalar_lea.hbm %s636_s2, 640 }
  0x26   : > { %p340_p0 = scmp.ne.s32.totalorder %s533_s11, %s339_s13  ;;  %p344_p3 = scmp.lt.u32.totalorder %s533_s11, %s636_s2 }
  0x27   : > { %p345_p4 = scmp.lt.u32.totalorder %s343_s1, %s339_s13  ;;  %p347_p7 = scmp.lt.u32.totalorder %s339_s13, %s533_s11 }
  0x28   : > { %p341_p1 = pnand %p340_p0, %p274_p13 }
  0x29   : > { %p346_p5 = por %p345_p4, %p344_p3 }
  0x2a   : > { %p342_p2 = pneg %p341_p1 }
  0x2b   : > { %p348_p8 = por %p347_p7, %p346_p5 }
  0x2d   : > { %p349_p11 = pnand %p348_p8, %p342_p2 }
  0x2f   : > { %352 = shalt.err (!%p349_p11)
}
  0x30   : > { %s353_s27 = scalar_lea.vmem %s535_s12, %s522_s4  ;;  %s435_s28 = smov [#allocation5]  }
  0x31   : > { %p354_p12 = scmp.ne.s32.totalorder %s535_s12, %s353_s27  ;;  %s357_s29 = sshll.u32 %s435_s28, 4  ;;  %s358_s29 = int_to_ptr.vmem [resolvable:$false] %s357_s29 }
  0x32   : > { %s359_s30 = scalar_lea.vmem %s358_s29, 512  ;;  %p360_p10 = scmp.lt.s32.totalorder %s535_s12, %s358_s29 }
  0x33   : > { %p355_p0 = pnand %p354_p12, %p274_p13  ;;  %p361_p3 = scmp.lt.s32.totalorder %s359_s30, %s353_s27 }
  0x35   : > { %p356_p1 = pneg %p355_p0  ;;  %p362_p4 = por %p361_p3, %p360_p10 }
  0x37   : > { %p363_p5 = pnand %p362_p4, %p356_p1 }
  0x39   : > { %366 = shalt.err (!%p363_p5)
}
  0x3a   : > { %s436_s5 = smov 128   ;;  %s437_s7 = smov 8  }
  0x3b   : > { %114 = dma.hbm_to_vmem [thread:$0]  (%p274_p13), %s533_s11, %s522_s4, %s535_s12, %s525_s6, %s436_s5, %s436_s5, %s437_s7  }
  0x3c PF: > { %p278_p2 = scmp.ge.s32.totalorder %s433_s19, 1  ;;  %p116_p7 = scmp.lt.s32.totalorder %s433_s19, 4 }
  0x3e   : > { %p117_p8 = pnand %p278_p2, %p116_p7 }
  0x3f   : > { %s565_s8 = sand.u32 (!%p117_p8), 1, %s425_s17  }
  0x40   : > { %120 = sbr.rel (%p117_p8) target bundleno = 130 (0x82), region = 24  ;;  %s279_s9 = sshll.u32 (!%p117_p8), %s565_s8, 4 }
  0x41   : > { %s123_s10 = scalar_lea.sflag (!%p117_p8), [#allocation6], %s565_s8  ;;  %s126_s13 = scalar_lea.vmem (!%p117_p8), [#allocation5], %s279_s9 }
  0x47   : > { %412 = dma.done.wait (%p506_p6), %s123_s10, 256  }
  0x48   : > { %414 = vsyncadd (%p506_p6), %s123_s10, 4294967040  ;;  %s155_s4 = sld [smem:[#allocation3]]  ;;  %v157_v1 = vld [vmem:[%s126_s13] sm:$0xff]  ;;  %v158_v3 = vld [vmem:[%s126_s13 + $0x8] sm:$0xff]  ;;  %s144_s24 = scalar_lea.vmem [#allocation8], %s279_s9 }
  0x49   : > { %s156_s6 = sld [smem:[#allocation4]]  ;;  %s176_s11 = scalar_lea.sflag [#allocation7], %s565_s8 }
  0x4a   : > { %s282_s12 = sshll.u32 (%p511_p9), %s488_s0, 1 }
  0x4b   : > { %s184_s14 = ssub.s32 (%p511_p9), 5, %s282_s12 }
  0x4c   : > { %p185_p6 = scmp.lt.s32.totalorder (%p511_p9), %s184_s14, 2 }
  0x4e   : > { %v159_v0 = vstv %s155_s4 }
  0x4f   : > { %v162_v2 = vstv %s156_s6  ;;  %v160_v4 = vmul.f32 %v159_v0, %v157_v1  ;;  %v161_v5 = vmul.f32 %v159_v0, %v158_v3 }
  0x51   : > { %v163_v6 = vadd.f32 %v162_v2, %v160_v4  ;;  %v164_v7 = vadd.f32 %v162_v2, %v161_v5 }
  0x53   : > { %v165_v8 = vmul.f32 0.5, %v163_v6  ;;  %v166_v9 = vmul.f32 0.5, %v164_v7 }
  0x55   : > { %335 = vtanh.f32 %v165_v8 }
  0x56   : > { %337 = vtanh.f32 %v166_v9 }
  0x5f   : > { %v336_v10 = vpop.eup %335  ;;  %182 = sbr.rel (!%p511_p9) target bundleno = 130 (0x82), region = 32 }
  0x60   : > { %v338_v11 = vpop.eup %337  ;;  %v169_v12 = vmul.f32 0.5, %v336_v10 }
  0x61   : > { %v170_v13 = vmul.f32 0.5, %v338_v11 }
  0x62   : > { %v171_v14 = vadd.f32 0.5, %v169_v12 }
  0x63   : > { %v172_v15 = vadd.f32 0.5, %v170_v13 }
  0x64   : > { %173 = vst [vmem:[%s144_s24] sm:$0xff] %v171_v14 }
  0x65   : > { %174 = vst [vmem:[%s144_s24 + $0x8] sm:$0xff] %v172_v15 }
  0x66   : > { %s649_s14 = smov (!%p185_p6, %s184_s14), 2 }
  0x67   : > { %s577_s15 = sshll.u32 %s649_s14, 7 }
  0x68   : > { %s189_s1 = ssub.s32 256, %s577_s15 }
  0x69   : > { %190 = vsyncadd %s176_s11, %s189_s1  ;;  %p284_p10 = scmp.ne.s32.totalorder %s577_s15, 0  ;;  %s291_s21 = sshll.u32 %s488_s0, 8 }
  0x6a   : > { %s587_s27 = scalar_lea.hbm %s637_s3, %s291_s21  ;;  %s195_s28 = sshll.u32 %s144_s24, 4  ;;  %s589_s28 = int_to_ptr.vmem [resolvable:$true] %s195_s28 }
  0x6b   : > { %s367_s29 = scalar_lea.vmem %s589_s28, %s577_s15  ;;  %s438_s30 = smov [#allocation8]  }
  0x6c   : > { %p368_p9 = scmp.ne.s32.totalorder %s589_s28, %s367_s29  ;;  %s371_s5 = sshll.u32 %s438_s30, 4  ;;  %s372_s5 = int_to_ptr.vmem [resolvable:$false] %s371_s5 }
  0x6d   : > { %s373_s0 = scalar_lea.vmem %s372_s5, 512  ;;  %p374_p12 = scmp.lt.s32.totalorder %s589_s28, %s372_s5 }
  0x6e   : > { %p369_p13 = pnand %p368_p9, %p284_p10  ;;  %p375_p0 = scmp.lt.s32.totalorder %s373_s0, %s367_s29 }
  0x70   : > { %p370_p11 = pneg %p369_p13  ;;  %p376_p1 = por %p375_p0, %p374_p12 }
  0x72   : > { %p377_p3 = pnand %p376_p1, %p370_p11 }
  0x74   : > { %380 = shalt.err (!%p377_p3)
}
  0x75   : > { %s381_s7 = scalar_lea.hbm %s587_s27, %s577_s15  ;;  %s385_s13 = scalar_lea.hbm %s637_s3, 640 }
  0x76   : > { %p382_p4 = scmp.ne.s32.totalorder %s587_s27, %s381_s7  ;;  %p386_p7 = scmp.lt.u32.totalorder %s587_s27, %s637_s3 }
  0x77   : > { %p387_p8 = scmp.lt.u32.totalorder %s385_s13, %s381_s7  ;;  %p389_p9 = scmp.lt.u32.totalorder %s381_s7, %s587_s27 }
  0x78   : > { %p383_p5 = pnand %p382_p4, %p284_p10 }
  0x79   : > { %p388_p6 = por %p387_p8, %p386_p7 }
  0x7a   : > { %p384_p2 = pneg %p383_p5 }
  0x7b   : > { %p390_p13 = por %p389_p9, %p388_p6 }
  0x7d   : > { %p391_p11 = pnand %p390_p13, %p384_p2 }
  0x7f   : > { %394 = shalt.err (!%p391_p11)
}
  0x80   : > { %s439_s24 = smov 128   ;;  %s440_s12 = smov 8  }
  0x81   : > { %201 = dma.vmem_to_hbm [thread:$0]  (%p284_p10), %s589_s28, %s577_s15, %s587_s27, %s176_s11, %s439_s24, %s439_s24, %s440_s12  }
  0x82 PF: > { %p298_p12 = scmp.ge.s32.totalorder %s433_s19, 2  ;;  %s210_s14 = sand.u32 1, %s421_s16  }
  0x83   : > { %p641_p0 = scmp.ne.s32.totalorder %s640_s26, 0  ;;  %s211_s1 = scalar_lea.sflag [#allocation7], %s210_s14 }
  0x85   : > { %p295_p1 = pnand %p298_p12, %p641_p0 }
  0x87   : > { %416 = dma.done.wait (!%p295_p1), %s211_s1, 256  }
  0x88   : > { %418 = vsyncadd (!%p295_p1), %s211_s1, 4294967040  ;;  %p18_p3 = scmp.ge.s32.totalorder %s492_s20, 5   ;;  %s642_s16 = smov %s425_s17 }
  0x89   : > { %s643_s17 = smov %s429_s18  ;;  %s644_s18 = smov %s504_s23 }
  0x8a   : > { %s645_s19 = smov %s492_s20  ;;  %20 = sbr.rel (!%p18_p3) target bundleno = 8 (0x8), region = 69 }
  0x91   :  { %216 = vsyncpa [#allocation6], 1 }
  0x92   :  { %218 = vsyncpa [#allocation6 + $0x1], 1 }
  0x93   :  { %219 = vsyncpa [#allocation7], 1 }
  0x94   :  { %221 = vsyncpa [#allocation7 + $0x1], 1 }

</bundles_post_ra>
